<compile_context>
chip_gen: v6e
topology: v6e:2x2x1
jax: 0.10.0
libtpu: 0.0.40
codegen_flags: <defaults>
</compile_context>

<pallas_src>
import functools

import jax
import jax.numpy as jnp
from jax import lax
from jax.experimental import pallas as pl
from jax.experimental.pallas import tpu as pltpu


def _interp_matrix(out_size: int, in_size: int, scale: float) -> jnp.ndarray:
    """Row-interpolation matrix matching F.interpolate(mode='bilinear',
    align_corners=False): out = A @ in, A shape (out_size, in_size)."""
    i = jnp.arange(out_size, dtype=jnp.float32)
    src = jnp.maximum((i + 0.5) / float(scale) - 0.5, 0.0)
    i0 = jnp.minimum(jnp.floor(src).astype(jnp.int32), in_size - 1)
    i1 = jnp.minimum(i0 + 1, in_size - 1)
    w1 = src - i0.astype(jnp.float32)
    w0 = 1.0 - w1
    rows = jnp.arange(out_size)
    A = jnp.zeros((out_size, in_size), jnp.float32)
    A = A.at[rows, i0].add(w0)
    A = A.at[rows, i1].add(w1)
    return A


def _row_shifted(a: jnp.ndarray):
    """(A_{-1}, A_0, A_{+1}) with A_d[i,:] = A[i+d,:], zero rows when out of range."""
    z = jnp.zeros((1, a.shape[1]), a.dtype)
    return (jnp.concatenate([z, a[:-1]], axis=0),
            a,
            jnp.concatenate([a[1:], z], axis=0))


def _depth_head_kernel(x_ref, ah_ref, m_ref, b_ref, o_ref):
    # x_ref:  (B_blk, H, C*W)    bf16, channels folded into lanes
    # ah_ref: (H2, H)            bf16 row-interp matrix (unshifted)
    # m_ref:  (3, C*W, W2_pad)   bf16 fused (col-interp x conv-weight) per vertical tap
    # b_ref:  (1,)               f32 conv bias (SMEM scalar)
    # o_ref:  (B_blk, 1, H2, W2_pad)
    b_blk = x_ref.shape[0]
    h2 = o_ref.shape[2]
    cw = x_ref.shape[2]

    ah = ah_ref[...]
    m0 = m_ref[0]
    m1 = m_ref[1]
    m2 = m_ref[2]
    bias = b_ref[0]
    row = lax.broadcasted_iota(jnp.int32, (h2, cw), 0)

    # Unrolled loop over the batch elements in this block (b_blk is static).
    for b in range(b_blk):
        # Stage 1: row interpolation (single small MXU matmul, f32 accumulation).
        r0 = jnp.dot(ah, x_ref[b], preferred_element_type=jnp.float32)  # (H2, C*W)

        # Derive the +-1 vertical conv taps as sublane rolls of R0 with zeroed
        # boundary rows (XLU + VPU, essentially free next to the MXU work).
        r_m1 = jnp.where(row == 0, 0.0, pltpu.roll(r0, shift=1, axis=0))        # R0[i-1]
        r_p1 = jnp.where(row == h2 - 1, 0.0, pltpu.roll(r0, shift=h2 - 1, axis=0))  # R0[i+1]

        # Stage 2: three fused (col-interp x conv) matmuls, accumulated in f32.
        acc = jnp.dot(r_m1.astype(m0.dtype), m0, preferred_element_type=jnp.float32)
        acc = acc + jnp.dot(r0.astype(m1.dtype), m1, preferred_element_type=jnp.float32)
        acc = acc + jnp.dot(r_p1.astype(m2.dtype), m2, preferred_element_type=jnp.float32)

        o_ref[b, 0, :, :] = (acc + bias).astype(o_ref.dtype)


def _pick_batch_block(B: int) -> int:
    """Largest per-step batch block that still leaves >= 2 grid steps (dual-TC)."""
    for cand in (8, 4, 2):
        if B % cand == 0 and B // cand >= 2:
            return cand
    return 1 if B >= 2 else B


@functools.partial(jax.jit, static_argnames=("scale",))
def depth_head_forward(x, conv_w, conv_b, scale):
    """x: (B, C, H, W) float32; conv_w: (1, C, 3, 3); conv_b: (1,)."""
    B, C, H, W = x.shape
    H2, W2 = int(H * scale), int(W * scale)
    W2_pad = pl.cdiv(W2, 128) * 128  # lane-dense output stores
    CW = C * W
    b_blk = _pick_batch_block(B)

    ah = _interp_matrix(H2, H, scale)  # (H2, H)
    aw = _interp_matrix(W2, W, scale)  # (W2, W)
    w = conv_w.reshape(C, 3, 3).astype(jnp.float32)
    b = conv_b.astype(jnp.float32)

    # Shifted column-interp matrices: (3, W2, W), index kj = horizontal tap.
    aw_sh = jnp.stack(_row_shifted(aw), axis=0)

    # Fuse column interp with conv weights per vertical tap ki:
    # M[ki, c*W + w_in, j] = sum_kj w[c,ki,kj] * Aw[j+kj-1, w_in]  (zero when OOB).
    m = jnp.einsum("ckq,qjw->kcwj", w, aw_sh).reshape(3, CW, W2)
    m = jnp.pad(m, ((0, 0), (0, 0), (0, W2_pad - W2)))  # pad lanes to 128 multiple

    # bf16 operands, f32 accumulation inside the kernel.
    ah_bf = ah.astype(jnp.bfloat16)
    m_bf = m.astype(jnp.bfloat16)

    # Fold channels into the lane dim: xt[b, h, c*W + w_in] = x[b, c, h, w_in].
    # TODO(synk): at production sizes, consume x in native (B,C,H,W) layout via a
    # C/K grid axis (or allow_input_fusion) to avoid this extra HBM round trip.
    xt = x.astype(jnp.bfloat16).transpose(0, 2, 1, 3).reshape(B, H, CW)

    # TODO(synk): for production C*W, add a K-tiling grid axis over C*W marked
    # 'arbitrary' with an f32 VMEM accumulator, single-buffer (pl.Buffered(1)) the
    # constant ah/m operands, and (on v5e) fuse the three tap matmuls into one
    # (H2, 3*C*W) @ (3*C*W, W2_pad) matmul once C*W is 128-aligned.
    out_pad = pl.pallas_call(
        _depth_head_kernel,
        out_shape=jax.ShapeDtypeStruct((B, 1, H2, W2_pad), x.dtype),
        grid_spec=pltpu.PrefetchScalarGridSpec(
            num_scalar_prefetch=0,
            grid=(B // b_blk,),
            in_specs=[
                pl.BlockSpec((b_blk, H, CW), lambda bi: (bi, 0, 0)),
                pl.BlockSpec((H2, H), lambda bi: (0, 0)),
                pl.BlockSpec((3, CW, W2_pad), lambda bi: (0, 0, 0)),
                pl.BlockSpec(memory_space=pltpu.MemorySpace.SMEM),
            ],
            out_specs=pl.BlockSpec((b_blk, 1, H2, W2_pad),
                                   lambda bi: (bi, 0, 0, 0)),
        ),
        compiler_params=pltpu.CompilerParams(
            dimension_semantics=("parallel",),
            vmem_limit_bytes=32 * 1024 * 1024,
        ),
    )(xt, ah_bf, m_bf, b)

    return out_pad[:, :, :, :W2]


def _reference(x, conv_w, conv_b, scale):
    """Pure-JAX f32 reference: same interp matrices + lax conv for the 3x3 layer."""
    ah = _interp_matrix(int(x.shape[2] * scale), x.shape[2], scale)
    aw = _interp_matrix(int(x.shape[3] * scale), x.shape[3], scale)
    up = jnp.einsum("oh,bchw,pw->bcop", ah, x, aw)  # (B, C, H2, W2)
    out = lax.conv_general_dilated(
        up, conv_w, window_strides=(1, 1), padding=((1, 1), (1, 1)),
        dimension_numbers=("NCHW", "OIHW", "NCHW"))
    return out + conv_b.reshape(1, 1, 1, 1)


if __name__ == "__main__":
    B, C, H, W = 2, 4, 16, 16
    scale = 2

    key = jax.random.PRNGKey(0)
    kx, kw, kb = jax.random.split(key, 3)
    x = jax.random.normal(kx, (B, C, H, W), dtype=jnp.float32)
    conv_w = jax.random.normal(kw, (1, C, 3, 3), dtype=jnp.float32) * 0.1
    conv_b = jax.random.normal(kb, (1,), dtype=jnp.float32) * 0.1

    out = depth_head_forward(x, conv_w, conv_b, scale)
    out = jax.block_until_ready(out)

    ref = jax.block_until_ready(_reference(x, conv_w, conv_b, scale))
    assert out.shape == (B, 1, H * scale, W * scale), out.shape
    # bf16 operands (f32 accumulation) -> compare with a tolerance appropriate
    # for one rounding step of the inputs/weights.
    max_err = float(jnp.max(jnp.abs(out - ref)))
    assert jnp.allclose(out, ref, atol=5e-2, rtol=5e-2), max_err

    print("KERNEL_OK")
</pallas_src>

<mosaic_0001>
module attributes {stable_mosaic.version = 11 : i64} {
  func.func private @main(%arg0: i32) attributes {dimension_semantics = [#tpu.dimension_semantics<core_parallel>], iteration_bounds = array<i64: 2>, tpu.core_type = #tpu.core_type<sc_scalar_subcore>, window_params = []} {
    return
  }
}

module attributes {stable_mosaic.version = 11 : i64} {
  func.func private @main(%arg0: i32) attributes {dimension_semantics = [#tpu.dimension_semantics<core_parallel>], iteration_bounds = array<i64: 2>, tpu.core_type = #tpu.core_type<sc_scalar_subcore>, window_params = []} {
    return
  }
}

module attributes {stable_mosaic.version = 11 : i64} {
  func.func @_depth_head_kernel(%arg0: i32, %arg1: memref<1x16x64xbf16, #tpu.memory_space<vmem>>, %arg2: memref<32x16xbf16, #tpu.memory_space<vmem>>, %arg3: memref<3x64x128xbf16, #tpu.memory_space<vmem>>, %arg4: memref<1xf32, #tpu.memory_space<smem>>, %arg5: memref<1x1x32x128xf32, #tpu.memory_space<vmem>>) attributes {dimension_semantics = [#tpu.dimension_semantics<parallel>], iteration_bounds = array<i64: 2>, scalar_prefetch = 0 : i64, scratch_operands = 0 : i64, tpu.core_type = #tpu.core_type<tc>, window_params = [{transform_indices = @transform_0, window_bounds = array<i64: 1, 16, 64>}, {pipeline_mode = #tpu.pipeline_mode<synchronous>, transform_indices = @transform_1, window_bounds = array<i64: 32, 16>}, {pipeline_mode = #tpu.pipeline_mode<synchronous>, transform_indices = @transform_2, window_bounds = array<i64: 3, 64, 128>}, {transform_indices = @transform_3, window_bounds = array<i64: 1>}, {transform_indices = @transform_4, window_bounds = array<i64: 1, 1, 32, 128>}]} {
    %c0 = arith.constant 0 : index
    %c0_0 = arith.constant 0 : index
    %0 = vector.load %arg2[%c0, %c0_0] : memref<32x16xbf16, #tpu.memory_space<vmem>>, vector<32x16xbf16>
    %c0_1 = arith.constant 0 : index
    %c0_2 = arith.constant 0 : index
    %c0_3 = arith.constant 0 : index
    %1 = vector.load %arg3[%c0_1, %c0_2, %c0_3] : memref<3x64x128xbf16, #tpu.memory_space<vmem>>, vector<1x64x128xbf16>
    %2 = vector.shape_cast %1 : vector<1x64x128xbf16> to vector<64x128xbf16>
    %c1 = arith.constant 1 : index
    %c0_4 = arith.constant 0 : index
    %c0_5 = arith.constant 0 : index
    %3 = vector.load %arg3[%c1, %c0_4, %c0_5] : memref<3x64x128xbf16, #tpu.memory_space<vmem>>, vector<1x64x128xbf16>
    %4 = vector.shape_cast %3 : vector<1x64x128xbf16> to vector<64x128xbf16>
    %c2 = arith.constant 2 : index
    %c0_6 = arith.constant 0 : index
    %c0_7 = arith.constant 0 : index
    %5 = vector.load %arg3[%c2, %c0_6, %c0_7] : memref<3x64x128xbf16, #tpu.memory_space<vmem>>, vector<1x64x128xbf16>
    %6 = vector.shape_cast %5 : vector<1x64x128xbf16> to vector<64x128xbf16>
    %c0_8 = arith.constant 0 : index
    %7 = memref.load %arg4[%c0_8] : memref<1xf32, #tpu.memory_space<smem>>
    %8 = tpu.iota {dimensions = array<i32: 0>} : vector<32x64xi32>
    %c0_9 = arith.constant 0 : index
    %c0_10 = arith.constant 0 : index
    %c0_11 = arith.constant 0 : index
    %9 = vector.load %arg1[%c0_9, %c0_10, %c0_11] : memref<1x16x64xbf16, #tpu.memory_space<vmem>>, vector<1x16x64xbf16>
    %10 = vector.shape_cast %9 : vector<1x16x64xbf16> to vector<16x64xbf16>
    %cst = arith.constant dense<0.000000e+00> : vector<32x64xf32>
    %11 = tpu.matmul %0, %10, %cst {dimension_numbers = #tpu.dot_dimension_numbers<[1], [0], [0], [1], [0, 0, 1, 1], [], []>} : vector<32x16xbf16>, vector<16x64xbf16>, vector<32x64xf32> -> vector<32x64xf32>
    %c0_i32 = arith.constant 0 : i32
    %12 = vector.broadcast %c0_i32 : i32 to vector<32x64xi32>
    %13 = arith.cmpi eq, %8, %12 : vector<32x64xi32>
    %c1_i32 = arith.constant 1 : i32
    %14 = tpu.dynamic_rotate %11 by %c1_i32 dim 0 : vector<32x64xf32>, i32 -> vector<32x64xf32>
    %cst_12 = arith.constant 0.000000e+00 : f32
    %15 = vector.broadcast %cst_12 : f32 to vector<32x64xf32>
    %16 = arith.select %13, %15, %14 : vector<32x64xi1>, vector<32x64xf32>
    %c31_i32 = arith.constant 31 : i32
    %17 = vector.broadcast %c31_i32 : i32 to vector<32x64xi32>
    %18 = arith.cmpi eq, %8, %17 : vector<32x64xi32>
    %c31_i32_13 = arith.constant 31 : i32
    %19 = tpu.dynamic_rotate %11 by %c31_i32_13 dim 0 : vector<32x64xf32>, i32 -> vector<32x64xf32>
    %cst_14 = arith.constant 0.000000e+00 : f32
    %20 = vector.broadcast %cst_14 : f32 to vector<32x64xf32>
    %21 = arith.select %18, %20, %19 : vector<32x64xi1>, vector<32x64xf32>
    %22 = arith.truncf %16 : vector<32x64xf32> to vector<32x64xbf16>
    %cst_15 = arith.constant dense<0.000000e+00> : vector<32x128xf32>
    %23 = tpu.matmul %22, %2, %cst_15 {dimension_numbers = #tpu.dot_dimension_numbers<[1], [0], [0], [1], [0, 0, 1, 1], [], []>} : vector<32x64xbf16>, vector<64x128xbf16>, vector<32x128xf32> -> vector<32x128xf32>
    %24 = arith.truncf %11 : vector<32x64xf32> to vector<32x64xbf16>
    %cst_16 = arith.constant dense<0.000000e+00> : vector<32x128xf32>
    %25 = tpu.matmul %24, %4, %cst_16 {dimension_numbers = #tpu.dot_dimension_numbers<[1], [0], [0], [1], [0, 0, 1, 1], [], []>} : vector<32x64xbf16>, vector<64x128xbf16>, vector<32x128xf32> -> vector<32x128xf32>
    %26 = arith.addf %23, %25 : vector<32x128xf32>
    %27 = arith.truncf %21 : vector<32x64xf32> to vector<32x64xbf16>
    %cst_17 = arith.constant dense<0.000000e+00> : vector<32x128xf32>
    %28 = tpu.matmul %27, %6, %cst_17 {dimension_numbers = #tpu.dot_dimension_numbers<[1], [0], [0], [1], [0, 0, 1, 1], [], []>} : vector<32x64xbf16>, vector<64x128xbf16>, vector<32x128xf32> -> vector<32x128xf32>
    %29 = arith.addf %26, %28 : vector<32x128xf32>
    %30 = vector.broadcast %7 : f32 to vector<32x128xf32>
    %31 = arith.addf %29, %30 : vector<32x128xf32>
    %c0_18 = arith.constant 0 : index
    %c0_19 = arith.constant 0 : index
    %c0_20 = arith.constant 0 : index
    %c0_21 = arith.constant 0 : index
    %32 = vector.load %arg5[%c0_18, %c0_19, %c0_20, %c0_21] : memref<1x1x32x128xf32, #tpu.memory_space<vmem>>, vector<1x1x32x128xf32>
    %33 = vector.shape_cast %32 : vector<1x1x32x128xf32> to vector<32x128xf32>
    %34 = vector.shape_cast %31 : vector<32x128xf32> to vector<1x1x32x128xf32>
    tpu.vector_store %arg5[%c0_18, %c0_19, %c0_20, %c0_21], %34 {strides = array<i32>} : memref<1x1x32x128xf32, #tpu.memory_space<vmem>>, vector<1x1x32x128xf32>,
    return
  }
  func.func @transform_0(%arg0: i32) -> (i32, i32, i32) {
    %c0_i32 = arith.constant 0 : i32
    %c0_i32_0 = arith.constant 0 : i32
    %c0_i32_1 = arith.constant 0 : i32
    return %arg0, %c0_i32, %c0_i32_0 : i32, i32, i32
  }
  func.func @transform_1(%arg0: i32) -> (i32, i32) {
    %c0_i32 = arith.constant 0 : i32
    %c0_i32_0 = arith.constant 0 : i32
    %c0_i32_1 = arith.constant 0 : i32
    return %c0_i32, %c0_i32_0 : i32, i32
  }
  func.func @transform_2(%arg0: i32) -> (i32, i32, i32) {
    %c0_i32 = arith.constant 0 : i32
    %c0_i32_0 = arith.constant 0 : i32
    %c0_i32_1 = arith.constant 0 : i32
    %c0_i32_2 = arith.constant 0 : i32
    return %c0_i32, %c0_i32_0, %c0_i32_1 : i32, i32, i32
  }
  func.func @transform_3(%arg0: i32) -> i32 {
    %c0_i32 = arith.constant 0 : i32
    %c0_i32_0 = arith.constant 0 : i32
    return %c0_i32 : i32
  }
  func.func @transform_4(%arg0: i32) -> (i32, i32, i32, i32) {
    %c0_i32 = arith.constant 0 : i32
    %c0_i32_0 = arith.constant 0 : i32
    %c0_i32_1 = arith.constant 0 : i32
    %c0_i32_2 = arith.constant 0 : i32
    return %arg0, %c0_i32, %c0_i32_0, %c0_i32_1 : i32, i32, i32, i32
  }
}

</mosaic_0001>

<bundles_post_ra>
// kernel: depth_head_forward.1
= control target key start
LH: loop header
LB: loop body
LE: loop exit
PB: predicated region body
PF: predicated region fallthrough
CT: control target
= control target key end

     0   :  { %s1104_s0 = inlined_call_operand.vmem [shape: bf16[2,16,64], index: 0, kind: input, shape index: {}]   ;;  %s1105_s1 = inlined_call_operand.vmem [shape: bf16[32,16], index: 1, kind: input, shape index: {}]   ;;  %s1106_s2 = inlined_call_operand.vmem [shape: bf16[3,64,128], index: 2, kind: input, shape index: {}]   ;;  %s1107_s3 = inlined_call_operand.<no memory space> [shape: f32[1], index: 3, kind: input, shape index: {}]   ;;  %s1108_s4 = inlined_call_operand.hbm [shape: f32[2,1,32,128], index: 4, kind: output, shape index: {}]  }
   0x1   :  { %9 = sst [smem:[#allocation2]] %s1107_s3 }
   0x2   :  { %10 = vsyncpa [#allocation4], 0 }
   0x3   :  { %12 = vsyncpa [#allocation4 + $0x1], 0  ;;  %s940_s17 = smov 0   ;;  %s942_s18 = smov 0  }
   0x4   :  { %s944_s19 = smov 0   ;;  %s946_s20 = smov 0  }
   0x5 LB: > { %s961_s3 = sadd.s32 4294967295, %s907_s20   ;;  %s675_s21 = sadd.s32 4294967294, %s907_s20   ;;  %s907_s20 = sphi %s946_s20, %s1114_s20   ;;  %s903_s19 = sphi %s944_s19, %s1113_s19   ;;  %s899_s18 = sphi %s942_s18, %s1112_s18   ;;  %s895_s17 = sphi %s940_s17, %s1111_s17  }
   0x6   : > { %s965_s22 = sadd.s32 1, %s907_s20   ;;  %s114_s23 = sadd.s32 1, %s903_s19 }
   0x7   : > { %s111_s24 = ssub.s32 %s907_s20, %s965_s22  ;;  %p124_p0 = scmp.ne.s32.totalorder %s903_s19, %s899_s18 }
   0x8   : > { %p112_p1 = scmp.eq.s32.totalorder %s111_s24, 0  ;;  %p125_p2 = scmp.eq.s32.totalorder %s961_s3, 1 }
   0x9   : > { %p130_p3 = scmp.ne.s32.totalorder %s899_s18, %s895_s17  ;;  %p131_p4 = scmp.eq.s32.totalorder %s675_s21, 1 }
   0xa   : > { %s976_s25 = scalar_select %p112_p1, %s903_s19, %s114_s23  }
   0xb   : > { %p978_p5 = por %p125_p2, %p124_p0  ;;  %p982_p6 = por %p131_p4, %p130_p3 }
   0xc   : > { %p678_p7 = scmp.ge.s32.totalorder %s907_s20, 1  ;;  %p166_p8 = scmp.lt.s32.totalorder %s907_s20, 3 }
   0xe   : > { %p167_p9 = pnand %p678_p7, %p166_p8 }
   0xf   : > { %p192_p10 = scmp.lt.s32.totalorder (!%p167_p9), %s961_s3, 1  ;;  %s228_s21 = sld [smem:[#allocation2]] (!%p167_p9) }
  0x10   : > { %170 = sbr.rel (%p167_p9) target bundleno = 465 (0x1d1), region = 36  ;;  %s189_s23 = sand.u32 (!%p167_p9), 1, %s899_s18  }
  0x11   : > { %s679_s24 = sshll.u32 (!%p167_p9), %s189_s23, 5  ;;  %s1064_s8 = scalar_lea.sflag (!%p167_p9), [#allocation4], %s189_s23 }
  0x12   : > { %s191_s28 = scalar_lea.vmem (!%p167_p9), [#allocation3], %s679_s24 }
  0x13   : > { %s613_s29 = sshll.u32 (!%p167_p9), %s191_s28, 4  ;;  %s1055_s29 = int_to_ptr.vmem [resolvable:$true] %s613_s29 }
  0x15   : > { %v833_v0 = vld [vmem:[%s1105_s1] sm:$0xff]   ;;  %vm252_vm0 = vcmask 130048   ;;  %s193_s30 = scalar_select %p192_p10, %s961_s3, 1  ;;  %v835_v1 = vld [vmem:[%s1106_s2 + $0x38] sm:$0xff]   ;;  %v836_v2 = vld [vmem:[%s1106_s2 + $0x30] sm:$0xff]   ;;  %v229_v12 = vlaneseq  ;;  %vm370_vm3 = vcmask 523264   ;;  %v590_v55 = vstv %s228_s21 }
  0x16   : > { %751 = vmatprep.mubr.msk.bf16.mxu0 %vm252_vm0, %v833_v0  ;;  %755 = vmatprep.subr.bf16.mxu1 %v835_v1  ;;  %v837_v3 = vld [vmem:[%s1106_s2 + $0x18] sm:$0xff]   ;;  %v834_v5 = vld [vmem:[%s1105_s1 + $0x8] sm:$0xff]   ;;  %v839_v7 = vld [vmem:[%s1106_s2 + $0x10] sm:$0xff]  }
  0x17   : > { %s726_s9 = sshll.u32 %s193_s30, 3  ;;  %756 = vmatpush3.bf16.msra.mxu1 %v835_v1  ;;  %v838_v6 = vld [vmem:[%s1106_s2 + $0x28] sm:$0xff]   ;;  %v840_v8 = vld [vmem:[%s1106_s2 + $0x20] sm:$0xff]   ;;  %v843_v11 = vld [vmem:[%s1106_s2 + $0x58] sm:$0xff]   ;;  %v230_v14 = vshrl.u32 %v229_v12, 7  ;;  %s727_s30 = sshll.u32 %s961_s3, 9 }
  0x18   : > { %s196_s14 = scalar_lea.vmem %s1104_s0, %s726_s9  ;;  %757 = vmatprep.subr.bf16.mxu1 %v836_v2  ;;  %v841_v9 = vld [vmem:[%s1106_s2 + $0x8] sm:$0xff]   ;;  %v842_v10 = vld [vmem:[%s1106_s2] sm:$0xff]   ;;  %v844_v34 = vld [vmem:[%s1106_s2 + $0x50] sm:$0xff]   ;;  %s1060_s7 = scalar_lea.hbm %s1108_s4, %s727_s30 }
  0x19   : > { %v832_v4 = vld [vmem:[%s196_s14] sm:$0xff]   ;;  %vm316_vm1 = vcmp.lt.s32.totalorder %v230_v14, 1  ;;  %vm308_vm2 = vcmp.eq.s32.totalorder %v230_v14, 0  ;;  %vm333_vm4 = vcmp.lt.s32.totalorder %v230_v14, 7  ;;  %v845_v38 = vld [vmem:[%s1106_s2 + $0x48] sm:$0xff]   ;;  %v233_v39 = vadd.s32 24, %v230_v14 }
  0x1a   : > { %749 = vmatprep.subr.bf16.mxu0 %v832_v4  ;;  %v846_v41 = vld [vmem:[%s1106_s2 + $0x40] sm:$0xff]   ;;  %s847_s3 = scalar_lea.vmem %s1055_s29, 512  ;;  %s909_s9 = smov [#allocation3]  }
  0x1b   : > { %750 = vmatpush3.bf16.msra.mxu0 %v832_v4  ;;  %758 = vmatpush3.bf16.msra.mxu1 %v836_v2  ;;  %vm328_vm5 = vcmp.eq.s32.totalorder %v233_v39, 31  ;;  %p848_p11 = scmp.ne.s32.totalorder %s1055_s29, %s847_s3  ;;  %s851_s10 = sshll.u32 %s909_s9, 4  ;;  %s852_s10 = int_to_ptr.vmem [resolvable:$false] %s851_s10 }
  0x1c   : > { %767 = vmatprep.subr.bf16.mxu0 %v837_v3  ;;  %759 = vmatprep.subr.bf16.mxu1 %v838_v6  ;;  %s853_s11 = scalar_lea.vmem %s852_s10, 1024  ;;  %p854_p0 = scmp.lt.s32.totalorder %s1055_s29, %s852_s10 }
  0x1d   : > { %p849_p12 = pnand %p848_p11, %p978_p5  ;;  %p855_p1 = scmp.lt.s32.totalorder %s853_s11, %s847_s3 }
  0x1e   : > { %752 = vmatmul.mubr.msk.bf16.vlgmr.msra.gmra.mxu0 %vm252_vm0, %v834_v5 }
  0x1f   : > { %768 = vmatpush3.bf16.msra.mxu0 %v837_v3  ;;  %760 = vmatpush3.bf16.msra.mxu1 %v838_v6  ;;  %p850_p13 = pneg %p849_p12  ;;  %p856_p2 = por %p855_p1, %p854_p0 }
  0x20   : > { %769 = vmatprep.subr.bf16.mxu0 %v839_v7  ;;  %761 = vmatprep.subr.bf16.mxu1 %v840_v8 }
  0x21   : > { %p857_p3 = pnand %p856_p2, %p850_p13 }
  0x23   : > { %770 = vmatpush3.bf16.msra.mxu0 %v839_v7  ;;  %762 = vmatpush3.bf16.msra.mxu1 %v840_v8 }
  0x24   : > { %771 = vmatprep.subr.bf16.mxu0 %v841_v9  ;;  %779 = vmatprep.subr.bf16.mxu1 %v843_v11 }
  0x27   : > { %772 = vmatpush3.bf16.msra.mxu0 %v841_v9 }
  0x28   : > { %773 = vmatprep.subr.bf16.mxu0 %v842_v10 }
  0x2b   : > { %774 = vmatpush3.bf16.msra.mxu0 %v842_v10 }
  0xde   : > { %v753_v13 = vpop.f32.mrf.mxu0 }
  0xdf   : > { %v314_v20 = vrot.slane %v753_v13, 7  ;;  %v331_v21 = vrot.slane %v753_v13, 1 }
  0xe0   : > { %v293_v15 = vpop.f32.mrf.mxu0 }
  0xe1   : > { %v312_v17 = vrot.slane %v293_v15, 7  ;;  %v329_v23 = vrot.slane %v293_v15, 1 }
  0xe2   : > { %v754_v16 = vpop.f32.mrf.mxu0 }
  0xe3   : > { %v315_v18 = vrot.slane %v754_v16, 7  ;;  %v345_v28 = vpack.c.bf16 %v754_v16, %v753_v13  ;;  %v332_v40 = vrot.slane %v754_v16, 1 }
  0xe4   : > { %v296_v19 = vpop.f32.mrf.mxu0 }
  0xe5   : > { %v320_v22 = vsel %vm316_vm1, %v315_v18, %v312_v17  ;;  %v313_v24 = vrot.slane %v296_v19, 7  ;;  %v330_v25 = vrot.slane %v296_v19, 1  ;;  %v344_v26 = vpack.c.bf16 %v296_v19, %v293_v15 }
  0xe6   : > { %v317_v27 = vsel %vm316_vm1, %v314_v20, %v315_v18  ;;  %v321_v29 = vsel %vm308_vm2, 0.0, %v320_v22  ;;  %v337_v42 = vsel %vm333_vm4, %v332_v40, %v329_v23  ;;  %v334_v43 = vsel %vm333_vm4, %v331_v21, %v332_v40 }
  0xe7   : > { %v318_v30 = vsel %vm316_vm1, %v313_v24, %v314_v20  ;;  %v319_v31 = vsel %vm316_vm1, %v312_v17, %v313_v24  ;;  %v335_v32 = vsel %vm333_vm4, %v330_v25, %v331_v21  ;;  %v336_v33 = vsel %vm333_vm4, %v329_v23, %v330_v25  ;;  %763 = vmatprep.mubr.msk.bf16.mxu1 %vm370_vm3, %v344_v26 }
  0xe8   : > { %v343_v35 = vpack.c.bf16 %v317_v27, %v318_v30  ;;  %764 = vmatmul.mubr.msk.bf16.vlgmr.msra.gmra.mxu1 %vm370_vm3, %v345_v28  ;;  %v342_v36 = vpack.c.bf16 %v319_v31, %v321_v29  ;;  %v505_v37 = vpack.c.bf16 %v335_v32, %v336_v33  ;;  %v341_v44 = vsel %vm328_vm5, 0.0, %v337_v42 }
  0xe9   : > { %780 = vmatpush3.bf16.msra.mxu1 %v843_v11  ;;  %v506_v45 = vpack.c.bf16 %v341_v44, %v334_v43 }
  0xea   : > { %775 = vmatprep.mubr.msk.bf16.mxu0 %vm370_vm3, %v342_v36  ;;  %787 = vmatprep.mubr.msk.bf16.mxu1 %vm370_vm3, %v505_v37 }
  0xeb   : > { %776 = vmatmul.mubr.msk.bf16.vlgmr.msra.gmra.mxu0 %vm370_vm3, %v343_v35  ;;  %781 = vmatprep.subr.bf16.mxu1 %v844_v34 }
  0xed   : > { %782 = vmatpush3.bf16.msra.mxu1 %v844_v34 }
  0xee   : > { %783 = vmatprep.subr.bf16.mxu1 %v845_v38 }
  0xf1   : > { %784 = vmatpush3.bf16.msra.mxu1 %v845_v38 }
  0xf2   : > { %785 = vmatprep.subr.bf16.mxu1 %v846_v41 }
  0xf5   : > { %786 = vmatpush3.bf16.msra.mxu1 %v846_v41 }
  0xf8   : > { %788 = vmatmul.mubr.msk.bf16.vlgmr.msra.gmra.mxu1 %vm370_vm3, %v506_v45 }
 0x1a8   : > { %v765_v46 = vpop.f32.mrf.mxu1 }
 0x1aa   : > { %v411_v47 = vpop.f32.mrf.mxu1 }
 0x1ab   : > { %v777_v48 = vpop.f32.mrf.mxu0 }
 0x1ac   : > { %v766_v49 = vpop.f32.mrf.mxu1  ;;  %v499_v53 = vadd.f32 %v777_v48, %v765_v46 }
 0x1ad   : > { %v490_v50 = vpop.f32.mrf.mxu0 }
 0x1ae   : > { %v414_v51 = vpop.f32.mrf.mxu1  ;;  %v491_v56 = vadd.f32 %v490_v50, %v411_v47 }
 0x1af   : > { %v778_v52 = vpop.f32.mrf.mxu0 }
 0x1b0   : > { %v502_v60 = vadd.f32 %v778_v52, %v766_v49 }
 0x1b1   : > { %v493_v58 = vpop.f32.mrf.mxu0 }
 0x1b2   : > { %v494_v0 = vadd.f32 %v493_v58, %v414_v51 }
 0x1b8   : > { %v789_v54 = vpop.f32.mrf.mxu1 }
 0x1b9   : > { %v588_v57 = vadd.f32 %v789_v54, %v499_v53 }
 0x1ba   : > { %v571_v59 = vpop.f32.mrf.mxu1 }
 0x1bb   : > { %v593_v61 = vadd.f32 %v590_v55, %v588_v57  ;;  %v586_v62 = vadd.f32 %v571_v59, %v491_v56 }
 0x1bc   : > { %v790_v63 = vpop.f32.mrf.mxu1 }
 0x1bd   : > { %597 = vst [vmem:[%s191_s28 + $0x10] sm:$0xff] %v593_v61  ;;  %v591_v1 = vadd.f32 %v590_v55, %v586_v62  ;;  %v589_v2 = vadd.f32 %v790_v63, %v502_v60 }
 0x1be   : > { %v574_v3 = vpop.f32.mrf.mxu1 }
 0x1bf   : > { %595 = vst [vmem:[%s191_s28] sm:$0xff] %v591_v1  ;;  %v594_v4 = vadd.f32 %v590_v55, %v589_v2  ;;  %v587_v5 = vadd.f32 %v574_v3, %v494_v0 }
 0x1c1   : > { %598 = vst [vmem:[%s191_s28 + $0x18] sm:$0xff] %v594_v4  ;;  %v592_v6 = vadd.f32 %v590_v55, %v587_v5 }
 0x1c3   : > { %596 = vst [vmem:[%s191_s28 + $0x8] sm:$0xff] %v592_v6 }
 0x1c4   : > { %860 = shalt.err (!%p857_p3)
}
 0x1c5   : > { %s861_s12 = scalar_lea.hbm %s1060_s7, 512  ;;  %s865_s15 = scalar_lea.hbm %s1108_s4, 1024 }
 0x1c6   : > { %p862_p4 = scmp.ne.s32.totalorder %s1060_s7, %s861_s12  ;;  %p866_p9 = scmp.lt.s32.totalorder %s1060_s7, %s1108_s4 }
 0x1c7   : > { %p867_p10 = scmp.lt.s32.totalorder %s865_s15, %s861_s12 }
 0x1c8   : > { %p863_p7 = pnand %p862_p4, %p978_p5 }
 0x1c9   : > { %p868_p11 = por %p867_p10, %p866_p9 }
 0x1ca   : > { %p864_p8 = pneg %p863_p7 }
 0x1cc   : > { %p869_p12 = pnand %p868_p11, %p864_p8 }
 0x1ce   : > { %872 = shalt.err (!%p869_p12)
}
 0x1cf   : > { %s910_s23 = smov 128   ;;  %s911_s24 = smov 8  }
 0x1d0   : > { %791 = dma.vmem_to_hbm [thread:$0]  (%p978_p5), %s1055_s29, 512, %s1060_s7, %s1064_s8, %s910_s23, %s910_s23, %s911_s24  }
 0x1d1 PF: > { %p797_p13 = scmp.ge.s32.totalorder %s907_s20, 2  ;;  %s628_s28 = sand.u32 1, %s895_s17  }
 0x1d2   : > { %s629_s30 = scalar_lea.sflag [#allocation4], %s628_s28 }
 0x1d3   : > { %p794_p0 = pnand %p797_p13, %p982_p6 }
 0x1d5   : > { %p795_p1 = pneg %p794_p0 }
 0x1d7   : > { %890 = dma.done.wait (%p795_p1), %s629_s30, 512  }
 0x1d8   : > { %892 = vsyncadd (%p795_p1), %s629_s30, 4294966784  ;;  %p15_p2 = scmp.ge.s32.totalorder %s965_s22, 4   ;;  %s1111_s17 = smov %s899_s18 }
 0x1d9   : > { %s1112_s18 = smov %s903_s19  ;;  %s1113_s19 = smov %s976_s25 }
 0x1da   : > { %s1114_s20 = smov %s965_s22  ;;  %17 = sbr.rel (!%p15_p2) target bundleno = 5 (0x5), region = 73 }
 0x1df   :  { %634 = vsyncpa [#allocation4], 1 }
 0x1e0   :  { %636 = vsyncpa [#allocation4 + $0x1], 1 }

</bundles_post_ra>
